<compile_context>
chip_gen: v7x
topology: tpu7x:2x2x1
jax: 0.10.0
libtpu: 0.0.40
codegen_flags: <defaults>
</compile_context>

<pallas_src>
import math

import jax
import jax.numpy as jnp
from jax import lax
from jax.experimental import pallas as pl
from jax.experimental.pallas import tpu as pltpu


def _round_up(x, m):
    return ((x + m - 1) // m) * m


def _pick_group(num_protos, hidden_size, max_gh=1024):
    """Largest prototype-group size G dividing P with G*H <= max_gh."""
    if num_protos * hidden_size <= max_gh:
        return num_protos
    best = 1
    for g in range(1, num_protos + 1):
        if num_protos % g == 0 and g * hidden_size <= max_gh:
            best = g
    # TODO(synk): if best < P and best % 8 != 0 the (G, TILE_N) output block is
    # not sublane-aligned; fine for small P, revisit for very large P/H.
    return best


def _proto_kernel(xt_ref, w1_ref, w2_ref, segp_ref, segt_ref, pn2_ref, o_ref):
    """One grid step = one N-tile x one prototype group.

    xt_ref  : (Din, TN)     transposed activations (reused across groups)
    w1_ref  : (1, GH, Din)  stacked layer-1 weights of the group
    w2_ref  : (1, GH, GH)   block-diagonal layer-2 weights of the group
    segp_ref: (1, G, GH)    prototype vectors scattered into their H-block
    segt_ref: (G, GH)       0/1 block segment-sum matrix (group independent)
    pn2_ref : (1, G, 1)     per-prototype squared norms
    o_ref   : (G, TN)       cosine scores (written once, prototype-major)
    """
    xt = xt_ref[...]

    # layers1[i]: ReLU(W1 @ x^T)            -> (GH, TN)
    h1 = lax.dot_general(w1_ref[0], xt, (((1,), (0,)), ((), ())),
                         preferred_element_type=jnp.float32)
    h1 = jnp.maximum(h1, 0.0).astype(w2_ref.dtype)

    # layers2[i]: ReLU(W2_blockdiag @ h1)   -> (GH, TN)
    h2 = lax.dot_general(w2_ref[0], h1, (((1,), (0,)), ((), ())),
                         preferred_element_type=jnp.float32)
    h2 = jnp.maximum(h2, 0.0)

    # Per-prototype reductions as MXU matmuls (segment sums over each H-block):
    #   dot[g, n] = sum_k proto_g[k] * h2[g*H + k, n]
    #   hn2[g, n] = sum_k h2[g*H + k, n]^2
    dot = lax.dot_general(segp_ref[0], h2, (((1,), (0,)), ((), ())),
                          preferred_element_type=jnp.float32)
    hn2 = lax.dot_general(segt_ref[...], h2 * h2, (((1,), (0,)), ((), ())),
                          preferred_element_type=jnp.float32)

    # torch CosineSimilarity: dot / sqrt(clamp_min(|h|^2 * |p|^2, eps^2))
    eps = jnp.float32(1e-6)
    denom = jnp.maximum(hn2 * pn2_ref[0], eps * eps)
    o_ref[...] = (dot * lax.rsqrt(denom)).astype(o_ref.dtype)


def prototypes_forward(hidden, w1, w2, protos):
    """hidden: (s1, s2, Din); w1: (P, H, Din); w2: (P, H, H); protos: (P, H)."""
    s1, s2, din = hidden.shape
    p_count, h, _ = w1.shape
    n = s1 * s2

    g = _pick_group(p_count, h)
    ng = p_count // g
    gh = g * h

    # N tiling: lane-aligned tiles; padded columns give cos == 0 and are
    # sliced off afterwards.
    if n <= 256:
        tile_n = _round_up(n, 128)
    else:
        tile_n = 256
    n_pad = _round_up(n, tile_n)

    x = hidden.reshape(n, din).astype(jnp.float32)
    x = jnp.pad(x, ((0, n_pad - n), (0, 0)))
    xt = x.T                                                     # (Din, n_pad)

    # Host-side weight prep (one-time): grouped layer-1 weights, block-diagonal
    # layer-2 weights, prototype segment matrices, prototype squared norms.
    w1g = w1.astype(jnp.float32).reshape(ng, gh, din)
    eye_g = jnp.eye(g, dtype=jnp.float32)
    w2bd = jnp.einsum('ngjk,gf->ngjfk',
                      w2.astype(jnp.float32).reshape(ng, g, h, h), eye_g)
    w2bd = w2bd.reshape(ng, gh, gh)

    protos_f32 = protos.astype(jnp.float32)
    protos_g = protos_f32.reshape(ng, g, h)
    segp = jnp.einsum('ngh,gf->ngfh', protos_g, eye_g).reshape(ng, g, gh)
    segt = jnp.repeat(eye_g, h, axis=1)                          # (G, GH)
    pn2 = jnp.sum(protos_f32 * protos_f32, axis=-1).reshape(ng, g, 1)

    grid = (n_pad // tile_n, ng)

    out = pl.pallas_call(
        _proto_kernel,
        out_shape=jax.ShapeDtypeStruct((p_count, n_pad), jnp.float32),
        grid=grid,
        in_specs=[
            pl.BlockSpec((din, tile_n), lambda ni, gi: (0, ni)),     # x^T tile
            pl.BlockSpec((1, gh, din), lambda ni, gi: (gi, 0, 0)),   # W1 group
            pl.BlockSpec((1, gh, gh), lambda ni, gi: (gi, 0, 0)),    # W2 blockdiag
            pl.BlockSpec((1, g, gh), lambda ni, gi: (gi, 0, 0)),     # proto-scatter
            pl.BlockSpec((g, gh), lambda ni, gi: (0, 0)),            # 0/1 segments
            pl.BlockSpec((1, g, 1), lambda ni, gi: (gi, 0, 0)),      # |p|^2
        ],
        out_specs=pl.BlockSpec((g, tile_n), lambda ni, gi: (gi, ni)),
        compiler_params=pltpu.CompilerParams(
            dimension_semantics=("parallel", "parallel")),
    )(xt, w1g, w2bd, segp, segt, pn2)

    out = out[:, :n]                                              # drop padding
    return out.T.reshape(s1, s2, p_count)


def _reference_forward(hidden, w1, w2, protos, eps=1e-6):
    """Pure-JAX reference replicating the torch module (clamps norm product)."""
    hp = lax.Precision.HIGHEST
    h1 = jnp.maximum(jnp.einsum('abd,phd->abph', hidden, w1, precision=hp), 0.0)
    h2 = jnp.maximum(jnp.einsum('abph,pkh->abpk', h1, w2, precision=hp), 0.0)
    w12 = jnp.sum(h2 * protos[None, None, :, :], axis=-1)
    w11 = jnp.sum(h2 * h2, axis=-1)
    w22 = jnp.sum(protos * protos, axis=-1)[None, None, :]
    return w12 / jnp.sqrt(jnp.maximum(w11 * w22, eps * eps))


if __name__ == "__main__":
    key = jax.random.PRNGKey(0)
    s1, s2 = 8, 2
    input_size, hidden_size, num_prototypes = 32, 32, 4

    k_x, k_w1, k_w2, k_p = jax.random.split(key, 4)
    hidden = jax.random.normal(k_x, (s1, s2, input_size), dtype=jnp.float32)
    w1 = jax.random.normal(
        k_w1, (num_prototypes, hidden_size, input_size),
        dtype=jnp.float32) * (1.0 / math.sqrt(input_size))
    w2 = jax.random.normal(
        k_w2, (num_prototypes, hidden_size, hidden_size),
        dtype=jnp.float32) * (1.0 / math.sqrt(hidden_size))
    protos = jax.random.normal(
        k_p, (num_prototypes, hidden_size), dtype=jnp.float32)

    cos_scores = prototypes_forward(hidden, w1, w2, protos)
    jax.block_until_ready(cos_scores)

    ref = _reference_forward(hidden, w1, w2, protos)
    assert cos_scores.shape == (s1, s2, num_prototypes)
    assert jnp.allclose(cos_scores, ref, atol=1e-4, rtol=1e-4), (
        float(jnp.max(jnp.abs(cos_scores - ref))))

    print("KERNEL_OK")
</pallas_src>

<mosaic_0001>
module attributes {stable_mosaic.version = 11 : i64} {
  func.func @_proto_kernel(%arg0: i32, %arg1: i32, %arg2: memref<32x128xf32, #tpu.memory_space<vmem>>, %arg3: memref<1x128x32xf32, #tpu.memory_space<vmem>>, %arg4: memref<1x128x128xf32, #tpu.memory_space<vmem>>, %arg5: memref<1x4x128xf32, #tpu.memory_space<vmem>>, %arg6: memref<4x128xf32, #tpu.memory_space<vmem>>, %arg7: memref<1x4x1xf32, #tpu.memory_space<vmem>>, %arg8: memref<4x128xf32, #tpu.memory_space<vmem>>) attributes {dimension_semantics = [#tpu.dimension_semantics<parallel>, #tpu.dimension_semantics<parallel>], iteration_bounds = array<i64: 1, 1>, scalar_prefetch = 0 : i64, scratch_operands = 0 : i64, tpu.core_type = #tpu.core_type<tc>, window_params = [{transform_indices = @transform_0, window_bounds = array<i64: 32, 128>}, {transform_indices = @transform_1, window_bounds = array<i64: 1, 128, 32>}, {transform_indices = @transform_2, window_bounds = array<i64: 1, 128, 128>}, {transform_indices = @transform_3, window_bounds = array<i64: 1, 4, 128>}, {pipeline_mode = #tpu.pipeline_mode<synchronous>, transform_indices = @transform_4, window_bounds = array<i64: 4, 128>}, {transform_indices = @transform_5, window_bounds = array<i64: 1, 4, 1>}, {transform_indices = @transform_6, window_bounds = array<i64: 4, 128>}]} {
    %c0 = arith.constant 0 : index
    %c0_0 = arith.constant 0 : index
    %0 = vector.load %arg2[%c0, %c0_0] : memref<32x128xf32, #tpu.memory_space<vmem>>, vector<32x128xf32>
    %c0_1 = arith.constant 0 : index
    %c0_2 = arith.constant 0 : index
    %c0_3 = arith.constant 0 : index
    %1 = vector.load %arg3[%c0_1, %c0_2, %c0_3] : memref<1x128x32xf32, #tpu.memory_space<vmem>>, vector<1x128x32xf32>
    %2 = vector.shape_cast %1 : vector<1x128x32xf32> to vector<128x32xf32>
    %cst = arith.constant dense<0.000000e+00> : vector<128x128xf32>
    %3 = tpu.matmul %2, %0, %cst {dimension_numbers = #tpu.dot_dimension_numbers<[1], [0], [0], [1], [0, 0, 1, 1], [], []>} : vector<128x32xf32>, vector<32x128xf32>, vector<128x128xf32> -> vector<128x128xf32>
    %cst_4 = arith.constant 0.000000e+00 : f32
    %4 = vector.broadcast %cst_4 : f32 to vector<128x128xf32>
    %5 = arith.maximumf %3, %4 : vector<128x128xf32>
    %c0_5 = arith.constant 0 : index
    %c0_6 = arith.constant 0 : index
    %c0_7 = arith.constant 0 : index
    %6 = vector.load %arg4[%c0_5, %c0_6, %c0_7] : memref<1x128x128xf32, #tpu.memory_space<vmem>>, vector<1x128x128xf32>
    %7 = vector.shape_cast %6 : vector<1x128x128xf32> to vector<128x128xf32>
    %cst_8 = arith.constant dense<0.000000e+00> : vector<128x128xf32>
    %8 = tpu.matmul %7, %5, %cst_8 {dimension_numbers = #tpu.dot_dimension_numbers<[1], [0], [0], [1], [0, 0, 1, 1], [], []>} : vector<128x128xf32>, vector<128x128xf32>, vector<128x128xf32> -> vector<128x128xf32>
    %cst_9 = arith.constant 0.000000e+00 : f32
    %9 = vector.broadcast %cst_9 : f32 to vector<128x128xf32>
    %10 = arith.maximumf %8, %9 : vector<128x128xf32>
    %c0_10 = arith.constant 0 : index
    %c0_11 = arith.constant 0 : index
    %c0_12 = arith.constant 0 : index
    %11 = vector.load %arg5[%c0_10, %c0_11, %c0_12] : memref<1x4x128xf32, #tpu.memory_space<vmem>>, vector<1x4x128xf32>
    %12 = vector.shape_cast %11 : vector<1x4x128xf32> to vector<4x128xf32>
    %cst_13 = arith.constant dense<0.000000e+00> : vector<4x128xf32>
    %13 = tpu.matmul %12, %10, %cst_13 {dimension_numbers = #tpu.dot_dimension_numbers<[1], [0], [0], [1], [0, 0, 1, 1], [], []>} : vector<4x128xf32>, vector<128x128xf32>, vector<4x128xf32> -> vector<4x128xf32>
    %c0_14 = arith.constant 0 : index
    %c0_15 = arith.constant 0 : index
    %14 = vector.load %arg6[%c0_14, %c0_15] : memref<4x128xf32, #tpu.memory_space<vmem>>, vector<4x128xf32>
    %15 = arith.mulf %10, %10 : vector<128x128xf32>
    %cst_16 = arith.constant dense<0.000000e+00> : vector<4x128xf32>
    %16 = tpu.matmul %14, %15, %cst_16 {dimension_numbers = #tpu.dot_dimension_numbers<[1], [0], [0], [1], [0, 0, 1, 1], [], []>} : vector<4x128xf32>, vector<128x128xf32>, vector<4x128xf32> -> vector<4x128xf32>
    %c0_17 = arith.constant 0 : index
    %c0_18 = arith.constant 0 : index
    %c0_19 = arith.constant 0 : index
    %17 = vector.load %arg7[%c0_17, %c0_18, %c0_19] : memref<1x4x1xf32, #tpu.memory_space<vmem>>, vector<1x4x1xf32>
    %18 = vector.shape_cast %17 : vector<1x4x1xf32> to vector<4x1xf32>
    %19 = vector.broadcast %18 : vector<4x1xf32> to vector<4x128xf32>
    %20 = arith.mulf %16, %19 : vector<4x128xf32>
    %cst_20 = arith.constant 9.99999997E-7 : f32
    %cst_21 = arith.constant 9.99999997E-7 : f32
    %21 = arith.mulf %cst_20, %cst_21 : f32
    %22 = vector.broadcast %21 : f32 to vector<4x128xf32>
    %23 = arith.maximumf %20, %22 : vector<4x128xf32>
    %24 = math.rsqrt %23 : vector<4x128xf32>
    %25 = arith.mulf %13, %24 : vector<4x128xf32>
    %c0_22 = arith.constant 0 : index
    %c0_23 = arith.constant 0 : index
    %26 = vector.load %arg8[%c0_22, %c0_23] : memref<4x128xf32, #tpu.memory_space<vmem>>, vector<4x128xf32>
    tpu.vector_store %arg8[%c0_22, %c0_23], %25 {strides = array<i32>} : memref<4x128xf32, #tpu.memory_space<vmem>>, vector<4x128xf32>,
    return
  }
  func.func @transform_0(%arg0: i32, %arg1: i32) -> (i32, i32) {
    %c0_i32 = arith.constant 0 : i32
    %c0_i32_0 = arith.constant 0 : i32
    return %c0_i32, %arg0 : i32, i32
  }
  func.func @transform_1(%arg0: i32, %arg1: i32) -> (i32, i32, i32) {
    %c0_i32 = arith.constant 0 : i32
    %c0_i32_0 = arith.constant 0 : i32
    %c0_i32_1 = arith.constant 0 : i32
    return %arg1, %c0_i32, %c0_i32_0 : i32, i32, i32
  }
  func.func @transform_2(%arg0: i32, %arg1: i32) -> (i32, i32, i32) {
    %c0_i32 = arith.constant 0 : i32
    %c0_i32_0 = arith.constant 0 : i32
    %c0_i32_1 = arith.constant 0 : i32
    return %arg1, %c0_i32, %c0_i32_0 : i32, i32, i32
  }
  func.func @transform_3(%arg0: i32, %arg1: i32) -> (i32, i32, i32) {
    %c0_i32 = arith.constant 0 : i32
    %c0_i32_0 = arith.constant 0 : i32
    %c0_i32_1 = arith.constant 0 : i32
    return %arg1, %c0_i32, %c0_i32_0 : i32, i32, i32
  }
  func.func @transform_4(%arg0: i32, %arg1: i32) -> (i32, i32) {
    %c0_i32 = arith.constant 0 : i32
    %c0_i32_0 = arith.constant 0 : i32
    %c0_i32_1 = arith.constant 0 : i32
    return %c0_i32, %c0_i32_0 : i32, i32
  }
  func.func @transform_5(%arg0: i32, %arg1: i32) -> (i32, i32, i32) {
    %c0_i32 = arith.constant 0 : i32
    %c0_i32_0 = arith.constant 0 : i32
    %c0_i32_1 = arith.constant 0 : i32
    return %arg1, %c0_i32, %c0_i32_0 : i32, i32, i32
  }
  func.func @transform_6(%arg0: i32, %arg1: i32) -> (i32, i32) {
    %c0_i32 = arith.constant 0 : i32
    return %arg1, %arg0 : i32, i32
  }
}

</mosaic_0001>

<bundles_post_ra>
// kernel: tpu_custom_call.1
= control target key start
LH: loop header
LB: loop body
LE: loop exit
PB: predicated region body
PF: predicated region fallthrough
CT: control target
= control target key end

     0   :  { %vm44_vm0 = vcmask 261120   ;;  %s1195_s0 = inlined_call_operand.vmem [shape: f32[32,128], index: 0, kind: input, shape index: {}]   ;;  %s1196_s1 = inlined_call_operand.vmem [shape: f32[1,128,32], index: 1, kind: input, shape index: {}]   ;;  %s1197_s2 = inlined_call_operand.vmem [shape: f32[1,128,128], index: 2, kind: input, shape index: {}]   ;;  %s1198_s3 = inlined_call_operand.vmem [shape: f32[1,4,128], index: 3, kind: input, shape index: {}]   ;;  %s1199_s4 = inlined_call_operand.vmem [shape: f32[4,128], index: 4, kind: input, shape index: {}]   ;;  %s1200_s5 = inlined_call_operand.vmem [shape: f32[1,4,1], index: 5, kind: input, shape index: {}]   ;;  %s1201_s6 = inlined_call_operand.hbm [shape: f32[4,128], index: 6, kind: output, shape index: {}]  }
   0x1   :  { %v24_v0 = vld [vmem:[%s1195_s0] sm:$0xff]  ;;  %v25_v1 = vld [vmem:[%s1195_s0 + $0x8] sm:$0xff]  ;;  %v26_v2 = vld [vmem:[%s1195_s0 + $0x10] sm:$0xff] }
   0x2   :  { %v874_v3 = vpack.c.bf16 %v25_v1, %v24_v0  ;;  %v27_v4 = vld [vmem:[%s1195_s0 + $0x18] sm:$0xff]  ;;  %v28_v5 = vld [vmem:[%s1196_s1] sm:$0xff] }
   0x3   :  { %v878_v6 = vpack.c.bf16 %v27_v4, %v26_v2  ;;  %724 = vmatprep.mubr.msk.f32.mxu0 %vm44_vm0, %v28_v5 }
   0x4   :  { %875 = vmatprep.subr.bf16.mxu0 %v874_v3 }
   0x5   :  { %877 = vmatpush3.bf16.msra.mxu0 %v874_v3 }
   0x6   :  { %879 = vmatprep.subr.bf16.mxu0 %v878_v6 }
   0x7   :  { %11 = vsyncpa [#allocation3], 0  ;;  %v29_v7 = vld [vmem:[%s1196_s1 + $0x8] sm:$0xff]  ;;  %v30_v8 = vld [vmem:[%s1196_s1 + $0x10] sm:$0xff]  ;;  %vm995_vm1 = vmmov 0   ;;  %s998_s20 = smov [#allocation2]  }
   0x8   :  { %v31_v9 = vld [vmem:[%s1196_s1 + $0x18] sm:$0xff]  ;;  %v32_v10 = vld [vmem:[%s1196_s1 + $0x20] sm:$0xff]  ;;  %v33_v11 = vld [vmem:[%s1196_s1 + $0x28] sm:$0xff]  ;;  %s606_s21 = sshll.u32 %s998_s20, 4  ;;  %s607_s21 = int_to_ptr.vmem [resolvable:$true] %s606_s21 }
   0x9   :  { %881 = vmatpush3.bf16.msra.mxu0 %v878_v6  ;;  %v34_v12 = vld [vmem:[%s1196_s1 + $0x30] sm:$0xff]  ;;  %v35_v13 = vld [vmem:[%s1196_s1 + $0x38] sm:$0xff]  ;;  %v36_v14 = vld [vmem:[%s1196_s1 + $0x40] sm:$0xff]  ;;  %p975_p1 = scmp.lt.s32.totalorder %s607_s21, %s607_s21 }
   0xa   :  { %v37_v15 = vld [vmem:[%s1196_s1 + $0x48] sm:$0xff]  ;;  %v38_v16 = vld [vmem:[%s1196_s1 + $0x50] sm:$0xff]  ;;  %v39_v17 = vld [vmem:[%s1196_s1 + $0x58] sm:$0xff] }
   0xb   :  { %v40_v18 = vld [vmem:[%s1196_s1 + $0x60] sm:$0xff]  ;;  %v41_v19 = vld [vmem:[%s1196_s1 + $0x68] sm:$0xff]  ;;  %v42_v20 = vld [vmem:[%s1196_s1 + $0x70] sm:$0xff] }
   0xc   :  { %725 = vmatmul.mubr.msk.f32.vlgmr.msra.gmra.mrb[0].mxu0 %vm44_vm0, %v29_v7  ;;  %v43_v21 = vld [vmem:[%s1196_s1 + $0x78] sm:$0xff]  ;;  %v254_v22 = vld [vmem:[%s1197_s2] sm:$0xff]  ;;  %v255_v63 = vld [vmem:[%s1197_s2 + $0x8] sm:$0xff] }
   0xd   :  { %727 = vmatprep.mubr.msk.f32.mxu0 %vm44_vm0, %v30_v8  ;;  %780 = vmatprep.mubr.f32.mxu1 %v254_v22  ;;  %v256_v0 = vld [vmem:[%s1197_s2 + $0x10] sm:$0xff]  ;;  %v257_v1 = vld [vmem:[%s1197_s2 + $0x18] sm:$0xff]  ;;  %v258_v2 = vld [vmem:[%s1197_s2 + $0x20] sm:$0xff] }
   0xe   :  { %v259_v3 = vld [vmem:[%s1197_s2 + $0x28] sm:$0xff]  ;;  %v260_v4 = vld [vmem:[%s1197_s2 + $0x30] sm:$0xff]  ;;  %v261_v5 = vld [vmem:[%s1197_s2 + $0x38] sm:$0xff] }
   0xf   :  { %v262_v6 = vld [vmem:[%s1197_s2 + $0x40] sm:$0xff]  ;;  %v263_v7 = vld [vmem:[%s1197_s2 + $0x48] sm:$0xff]  ;;  %v264_v8 = vld [vmem:[%s1197_s2 + $0x50] sm:$0xff] }
  0x10   :  { %728 = vmatmul.mubr.msk.f32.gmra.mrb[2].mxu0 %vm44_vm0, %v31_v9  ;;  %v265_v9 = vld [vmem:[%s1197_s2 + $0x58] sm:$0xff] }
  0x11   :  { %730 = vmatprep.mubr.msk.f32.mxu0 %vm44_vm0, %v32_v10  ;;  %v266_v10 = vld [vmem:[%s1197_s2 + $0x60] sm:$0xff] }
  0x14   :  { %731 = vmatmul.mubr.msk.f32.gmra.mrb[4].mxu0 %vm44_vm0, %v33_v11  ;;  %v267_v11 = vld [vmem:[%s1197_s2 + $0x68] sm:$0xff] }
  0x15   :  { %733 = vmatprep.mubr.msk.f32.mxu0 %vm44_vm0, %v34_v12  ;;  %v268_v12 = vld [vmem:[%s1197_s2 + $0x70] sm:$0xff] }
  0x18   :  { %734 = vmatmul.mubr.msk.f32.gmra.mrb[6].mxu0 %vm44_vm0, %v35_v13  ;;  %v269_v13 = vld [vmem:[%s1197_s2 + $0x78] sm:$0xff] }
  0x19   :  { %736 = vmatprep.mubr.msk.f32.mxu0 %vm44_vm0, %v36_v14  ;;  %v994_v14 = vmov 0.0|0.0  }
  0x1a   :  { %914 = vmatprep.subr.bf16.mxu0 %v994_v14 }
  0x1c   :  { %737 = vmatmul.mubr.msk.f32.gmra.mrb[8].mxu0 %vm44_vm0, %v37_v15  ;;  %v996_v15 = vmov 0.0  }
  0x1d   :  { %739 = vmatprep.mubr.msk.f32.mxu0 %vm44_vm0, %v38_v16  ;;  %v589_v16 = vld [vmem:[%s1200_s5] sm:$0xf] }
  0x20   :  { %740 = vmatmul.mubr.msk.f32.gmra.mrb[10].mxu0 %vm44_vm0, %v39_v17  ;;  %v997_v17 = vmov 0  }
  0x21   :  { %742 = vmatprep.mubr.msk.f32.mxu0 %vm44_vm0, %v40_v18  ;;  %967 = vset.pattern.permute.xlu0 %v997_v17 }
  0x22   :  { %592 = vperm.xlu0 %967, %v589_v16  }
  0x24   :  { %743 = vmatmul.mubr.msk.f32.gmra.mrb[12].mxu0 %vm44_vm0, %v41_v19 }
  0x25   :  { %745 = vmatprep.mubr.msk.f32.mxu0 %vm44_vm0, %v42_v20 }
  0x28   :  { %746 = vmatmul.mubr.msk.f32.gmra.mrb[14].mxu0 %vm44_vm0, %v43_v21 }
  0x29   :  { %836 = vmatprep.mubr.msk.f32.mxu0 %vm995_vm1, %v996_v15 }
  0xdf   :  { %v726_v23 = vpop.f32.mrb[0].mxu0 }
  0xe0   :  { %v239_v24 = vmax.f32 %v726_v23, 0.0  ;;  %v159_v25 = vpop.f32.mrb[1].mxu0 }
  0xe1   :  { %v238_v26 = vmax.f32 %v159_v25, 0.0 }
  0xe3   :  { %v729_v27 = vpop.f32.mrb[2].mxu0  ;;  %v882_v28 = vpack.c.bf16 %v239_v24, %v238_v26 }
  0xe4   :  { %v241_v29 = vmax.f32 %v729_v27, 0.0  ;;  %v169_v30 = vpop.f32.mrb[3].mxu0 }
  0xe5   :  { %v240_v31 = vmax.f32 %v169_v30, 0.0  ;;  %883 = vmatprep.subr.bf16.mxu1 %v882_v28 }
  0xe6   :  { %885 = vmatpush3.bf16.msra.mxu1 %v882_v28 }
  0xe7   :  { %v886_v32 = vpack.c.bf16 %v241_v29, %v240_v31  ;;  %v732_v33 = vpop.f32.mrb[4].mxu0 }
  0xe8   :  { %v243_v34 = vmax.f32 %v732_v33, 0.0  ;;  %v179_v35 = vpop.f32.mrb[5].mxu0 }
  0xe9   :  { %v242_v36 = vmax.f32 %v179_v35, 0.0  ;;  %887 = vmatprep.subr.bf16.mxu1 %v886_v32 }
  0xea   :  { %889 = vmatpush3.bf16.msra.mxu1 %v886_v32 }
  0xeb   :  { %v890_v37 = vpack.c.bf16 %v243_v34, %v242_v36  ;;  %v735_v38 = vpop.f32.mrb[6].mxu0 }
  0xec   :  { %v245_v39 = vmax.f32 %v735_v38, 0.0  ;;  %v189_v40 = vpop.f32.mrb[7].mxu0 }
  0xed   :  { %v244_v41 = vmax.f32 %v189_v40, 0.0  ;;  %891 = vmatprep.subr.bf16.mxu1 %v890_v37 }
  0xee   :  { %893 = vmatpush3.bf16.msra.mxu1 %v890_v37 }
  0xef   :  { %v894_v42 = vpack.c.bf16 %v245_v39, %v244_v41  ;;  %v738_v43 = vpop.f32.mrb[8].mxu0 }
  0xf0   :  { %v247_v44 = vmax.f32 %v738_v43, 0.0  ;;  %v199_v45 = vpop.f32.mrb[9].mxu0 }
  0xf1   :  { %v246_v46 = vmax.f32 %v199_v45, 0.0  ;;  %895 = vmatprep.subr.bf16.mxu1 %v894_v42 }
  0xf2   :  { %897 = vmatpush3.bf16.msra.mxu1 %v894_v42 }
  0xf3   :  { %v898_v47 = vpack.c.bf16 %v247_v44, %v246_v46  ;;  %v741_v48 = vpop.f32.mrb[10].mxu0 }
  0xf4   :  { %v249_v49 = vmax.f32 %v741_v48, 0.0  ;;  %v209_v50 = vpop.f32.mrb[11].mxu0 }
  0xf5   :  { %v248_v51 = vmax.f32 %v209_v50, 0.0  ;;  %899 = vmatprep.subr.bf16.mxu1 %v898_v47 }
  0xf6   :  { %901 = vmatpush3.bf16.msra.mxu1 %v898_v47 }
  0xf7   :  { %v902_v52 = vpack.c.bf16 %v249_v49, %v248_v51  ;;  %v744_v53 = vpop.f32.mrb[12].mxu0 }
  0xf8   :  { %v251_v54 = vmax.f32 %v744_v53, 0.0  ;;  %v219_v55 = vpop.f32.mrb[13].mxu0 }
  0xf9   :  { %v250_v56 = vmax.f32 %v219_v55, 0.0  ;;  %903 = vmatprep.subr.bf16.mxu1 %v902_v52 }
  0xfa   :  { %905 = vmatpush3.bf16.msra.mxu1 %v902_v52 }
  0xfb   :  { %v906_v57 = vpack.c.bf16 %v251_v54, %v250_v56  ;;  %v747_v58 = vpop.f32.mrb[14].mxu0 }
  0xfc   :  { %v253_v59 = vmax.f32 %v747_v58, 0.0  ;;  %v229_v60 = vpop.f32.mrb[15].mxu0 }
  0xfd   :  { %v252_v61 = vmax.f32 %v229_v60, 0.0  ;;  %907 = vmatprep.subr.bf16.mxu1 %v906_v57 }
  0xfe   :  { %909 = vmatpush3.bf16.msra.mxu1 %v906_v57 }
  0xff   :  { %v910_v62 = vpack.c.bf16 %v253_v59, %v252_v61 }
 0x101   :  { %911 = vmatprep.subr.bf16.mxu1 %v910_v62 }
 0x102   :  { %913 = vmatpush3.bf16.msra.mxu1 %v910_v62 }
 0x103   :  { %938 = vmatprep.subr.bf16.mxu1 %v994_v14 }
 0x105   :  { %781 = vmatmul.mubr.f32.vlgmr.msra.gmra.mrb[0].mxu1 %v255_v63 }
 0x106   :  { %783 = vmatprep.mubr.f32.mxu1 %v256_v0 }
 0x109   :  { %784 = vmatmul.mubr.f32.gmra.mrb[2].mxu1 %v257_v1 }
 0x10a   :  { %786 = vmatprep.mubr.f32.mxu1 %v258_v2 }
 0x10d   :  { %787 = vmatmul.mubr.f32.gmra.mrb[4].mxu1 %v259_v3 }
 0x10e   :  { %789 = vmatprep.mubr.f32.mxu1 %v260_v4 }
 0x111   :  { %790 = vmatmul.mubr.f32.gmra.mrb[6].mxu1 %v261_v5 }
 0x112   :  { %792 = vmatprep.mubr.f32.mxu1 %v262_v6 }
 0x115   :  { %793 = vmatmul.mubr.f32.gmra.mrb[8].mxu1 %v263_v7 }
 0x116   :  { %795 = vmatprep.mubr.f32.mxu1 %v264_v8 }
 0x119   :  { %796 = vmatmul.mubr.f32.gmra.mrb[10].mxu1 %v265_v9 }
 0x11a   :  { %798 = vmatprep.mubr.f32.mxu1 %v266_v10 }
 0x11d   :  { %799 = vmatmul.mubr.f32.gmra.mrb[12].mxu1 %v267_v11 }
 0x11e   :  { %801 = vmatprep.mubr.f32.mxu1 %v268_v12 }
 0x121   :  { %802 = vmatmul.mubr.f32.gmra.mrb[14].mxu1 %v269_v13 }
 0x122   :  { %871 = vmatprep.mubr.msk.f32.mxu1 %vm995_vm1, %v996_v15 }
 0x1d8   :  { %v782_v18 = vpop.f32.mrb[0].mxu1 }
 0x1d9   :  { %v416_v19 = vmax.f32 %v782_v18, 0.0  ;;  %v336_v20 = vpop.f32.mrb[1].mxu1 }
 0x1da   :  { %v415_v21 = vmax.f32 %v336_v20, 0.0  ;;  %v502_v20 = vld [vmem:[%s1199_s4] sm:$0xf] }
 0x1db   :  { %v504_v22 = vmul.f32 %v416_v19, %v416_v19 }
 0x1dc   :  { %v915_v23 = vpack.c.bf16 %v416_v19, %v415_v21  ;;  %v503_v24 = vmul.f32 %v415_v21, %v415_v21  ;;  %v785_v25 = vpop.f32.mrb[2].mxu1  ;;  %v431_v19 = vld [vmem:[%s1198_s3] sm:$0xf]  ;;  %v593_v21 = vpop.permute.xlu0 %592  ;;  %s970_s3 = scalar_lea.vmem %s607_s21, 64 }
 0x1dd   :  { %v418_v26 = vmax.f32 %v785_v25, 0.0  ;;  %v346_v27 = vpop.f32.mrb[3].mxu1  ;;  %p971_p0 = scmp.ne.s32.totalorder %s607_s21, %s970_s3  ;;  %p976_p2 = scmp.lt.s32.totalorder %s970_s3, %s970_s3 }
 0x1de   :  { %v939_v28 = vpack.c.bf16 %v504_v22, %v503_v24  ;;  %v417_v29 = vmax.f32 %v346_v27, 0.0  ;;  %916 = vmatpush3.bf16.msra.mxu0 %v915_v23 }
 0x1df   :  { %v506_v30 = vmul.f32 %v418_v26, %v418_v26  ;;  %917 = vmatprep.subr.bf16.mxu0 %v994_v14  ;;  %p977_p3 = por %p976_p2, %p975_p1 }
 0x1e0   :  { %v918_v31 = vpack.c.bf16 %v418_v26, %v417_v29  ;;  %v505_v32 = vmul.f32 %v417_v29, %v417_v29  ;;  %v788_v33 = vpop.f32.mrb[4].mxu1  ;;  %940 = vmatpush3.bf16.msra.mxu1 %v939_v28 }
 0x1e1   :  { %v420_v34 = vmax.f32 %v788_v33, 0.0  ;;  %v356_v35 = vpop.f32.mrb[5].mxu1  ;;  %941 = vmatprep.subr.bf16.mxu1 %v994_v14  ;;  %p978_p4 = pnand %p977_p3, %p971_p0 }
 0x1e2   :  { %v942_v36 = vpack.c.bf16 %v506_v30, %v505_v32  ;;  %v419_v37 = vmax.f32 %v356_v35, 0.0  ;;  %919 = vmatpush3.bf16.msra.mxu0 %v918_v31 }
 0x1e3   :  { %v508_v38 = vmul.f32 %v420_v34, %v420_v34  ;;  %920 = vmatprep.subr.bf16.mxu0 %v994_v14 }
 0x1e4   :  { %v921_v39 = vpack.c.bf16 %v420_v34, %v419_v37  ;;  %v507_v40 = vmul.f32 %v419_v37, %v419_v37  ;;  %v791_v41 = vpop.f32.mrb[6].mxu1  ;;  %943 = vmatpush3.bf16.msra.mxu1 %v942_v36 }
 0x1e5   :  { %v422_v42 = vmax.f32 %v791_v41, 0.0  ;;  %v366_v43 = vpop.f32.mrb[7].mxu1  ;;  %944 = vmatprep.subr.bf16.mxu1 %v994_v14 }
 0x1e6   :  { %v945_v44 = vpack.c.bf16 %v508_v38, %v507_v40  ;;  %v421_v45 = vmax.f32 %v366_v43, 0.0  ;;  %922 = vmatpush3.bf16.msra.mxu0 %v921_v39 }
 0x1e7   :  { %v510_v46 = vmul.f32 %v422_v42, %v422_v42  ;;  %923 = vmatprep.subr.bf16.mxu0 %v994_v14 }
 0x1e8   :  { %v924_v47 = vpack.c.bf16 %v422_v42, %v421_v45  ;;  %v509_v48 = vmul.f32 %v421_v45, %v421_v45  ;;  %v794_v49 = vpop.f32.mrb[8].mxu1  ;;  %946 = vmatpush3.bf16.msra.mxu1 %v945_v44 }
 0x1e9   :  { %v424_v50 = vmax.f32 %v794_v49, 0.0  ;;  %v376_v51 = vpop.f32.mrb[9].mxu1  ;;  %947 = vmatprep.subr.bf16.mxu1 %v994_v14 }
 0x1ea   :  { %v948_v52 = vpack.c.bf16 %v510_v46, %v509_v48  ;;  %v423_v53 = vmax.f32 %v376_v51, 0.0  ;;  %925 = vmatpush3.bf16.msra.mxu0 %v924_v47 }
 0x1eb   :  { %v512_v54 = vmul.f32 %v424_v50, %v424_v50  ;;  %926 = vmatprep.subr.bf16.mxu0 %v994_v14 }
 0x1ec   :  { %v927_v55 = vpack.c.bf16 %v424_v50, %v423_v53  ;;  %v511_v56 = vmul.f32 %v423_v53, %v423_v53  ;;  %v797_v57 = vpop.f32.mrb[10].mxu1  ;;  %949 = vmatpush3.bf16.msra.mxu1 %v948_v52 }
 0x1ed   :  { %v426_v58 = vmax.f32 %v797_v57, 0.0  ;;  %v386_v59 = vpop.f32.mrb[11].mxu1  ;;  %950 = vmatprep.subr.bf16.mxu1 %v994_v14 }
 0x1ee   :  { %v951_v60 = vpack.c.bf16 %v512_v54, %v511_v56  ;;  %v425_v61 = vmax.f32 %v386_v59, 0.0  ;;  %928 = vmatpush3.bf16.msra.mxu0 %v927_v55 }
 0x1ef   :  { %v514_v62 = vmul.f32 %v426_v58, %v426_v58  ;;  %929 = vmatprep.subr.bf16.mxu0 %v994_v14 }
 0x1f0   :  { %v930_v63 = vpack.c.bf16 %v426_v58, %v425_v61  ;;  %v513_v0 = vmul.f32 %v425_v61, %v425_v61  ;;  %v800_v1 = vpop.f32.mrb[12].mxu1  ;;  %952 = vmatpush3.bf16.msra.mxu1 %v951_v60 }
 0x1f1   :  { %v428_v2 = vmax.f32 %v800_v1, 0.0  ;;  %v396_v3 = vpop.f32.mrb[13].mxu1  ;;  %953 = vmatprep.subr.bf16.mxu1 %v994_v14 }
 0x1f2   :  { %v954_v4 = vpack.c.bf16 %v514_v62, %v513_v0  ;;  %v427_v5 = vmax.f32 %v396_v3, 0.0  ;;  %931 = vmatpush3.bf16.msra.mxu0 %v930_v63 }
 0x1f3   :  { %v516_v6 = vmul.f32 %v428_v2, %v428_v2  ;;  %932 = vmatprep.subr.bf16.mxu0 %v994_v14 }
 0x1f4   :  { %v933_v7 = vpack.c.bf16 %v428_v2, %v427_v5  ;;  %v515_v8 = vmul.f32 %v427_v5, %v427_v5  ;;  %v803_v9 = vpop.f32.mrb[14].mxu1  ;;  %955 = vmatpush3.bf16.msra.mxu1 %v954_v4 }
 0x1f5   :  { %v430_v10 = vmax.f32 %v803_v9, 0.0  ;;  %v406_v11 = vpop.f32.mrb[15].mxu1  ;;  %956 = vmatprep.subr.bf16.mxu1 %v994_v14 }
 0x1f6   :  { %v957_v12 = vpack.c.bf16 %v516_v6, %v515_v8  ;;  %v429_v13 = vmax.f32 %v406_v11, 0.0  ;;  %934 = vmatpush3.bf16.msra.mxu0 %v933_v7 }
 0x1f7   :  { %v518_v15 = vmul.f32 %v430_v10, %v430_v10  ;;  %935 = vmatprep.subr.bf16.mxu0 %v994_v14 }
 0x1f8   :  { %v936_v16 = vpack.c.bf16 %v430_v10, %v429_v13  ;;  %v517_v17 = vmul.f32 %v429_v13, %v429_v13  ;;  %958 = vmatpush3.bf16.msra.mxu1 %v957_v12 }
 0x1f9   :  { %959 = vmatprep.subr.bf16.mxu1 %v994_v14 }
 0x1fa   :  { %v960_v18 = vpack.c.bf16 %v518_v15, %v517_v17  ;;  %937 = vmatpush3.bf16.msra.mxu0 %v936_v16 }
 0x1fc   :  { %961 = vmatpush3.bf16.msra.mxu1 %v960_v18 }
 0x1fd   :  { %837 = vmatmul.mubr.f32.vlgmr.msra.gmra.mrb[16].mxu0 %v431_v19 }
 0x1ff   :  { %872 = vmatmul.mubr.f32.vlgmr.msra.gmra.mrb[16].mxu1 %v502_v20 }
 0x2d0   :  { %v498_v22 = vpop.f32.mrb[16].mxu0 }
 0x2d1   :  { %v838_v23 = vpop.f32.mrb[17].mxu0 }
 0x2d2   :  { %v585_v24 = vpop.f32.mrb[16].mxu1 }
 0x2d3   :  { %v595_v25 = vmul.f32 %v593_v21, %v585_v24  ;;  %v873_v26 = vpop.f32.mrb[17].mxu1 }
 0x2d5   :  { %v596_v14 = vmax.f32 %v595_v25, 1e-12 }
 0x2d7   :  { %968 = vrsqrt.f32 %v596_v14 }
 0x2e1   :  { %v969_v27 = vpop.eup %968 }
 0x2e2   :  { %v598_v28 = vmul.f32 %v969_v27, %v498_v22 }
 0x2e4   :  { %599 = vst [vmem:[#allocation2] sm:$0xf] %v598_v28 }
 0x2e5   :  { %981 = shalt.err (!%p978_p4)
}
 0x2e6   :  { %s982_s23 = scalar_lea.hbm %s1201_s6, 64 }
 0x2e7   :  { %p983_p5 = scmp.ne.s32.totalorder %s1201_s6, %s982_s23  ;;  %p986_p6 = scmp.lt.u32.totalorder %s982_s23, %s1201_s6 }
 0x2e9   :  { %p988_p7 = pnand %p986_p6, %p983_p5 }
 0x2eb   :  { %991 = shalt.err (!%p988_p7)
}
 0x2ec   :  { %609 = dma.vmem_to_hbm [thread:$0]  %s607_s21, 64, %s1201_s6, [#allocation3]  }
 0x2ed   :  { %992 = dma.done.wait [#allocation3], 64  }
 0x2ee   :  { %993 = vsyncadd [#allocation3], 4294967232 }
 0x2ef   :  { %613 = vsyncpa [#allocation3], 1 }

</bundles_post_ra>
